<compile_context>
chip_gen: v5e
topology: v5e:2x2
jax: 0.10.0
libtpu: 0.0.40
codegen_flags: <defaults>
</compile_context>

<pallas_src>
import functools

import numpy as np
import jax
import jax.numpy as jnp
from jax.experimental import pallas as pl
from jax.experimental.pallas import tpu as pltpu

_VMEM_LIMIT = 64 * 1024 * 1024  # explicit cap: safe on v5e/v6e (128 MiB) and v7x (64 MiB)


def _pick_tile(dim, prefs):
    """Largest preferred tile that divides `dim`, else the full dim (legal per BlockSpec rules)."""
    for p in prefs:
        if p <= dim and dim % p == 0:
            return p
    return dim


# --------------------------- tiled matmul kernels ---------------------------

def _matmul_kernel(x_ref, w_ref, o_ref, acc_ref):
    @pl.when(pl.program_id(2) == 0)
    def _():
        acc_ref[...] = jnp.zeros_like(acc_ref)

    acc_ref[...] += jnp.dot(x_ref[...], w_ref[...],
                            preferred_element_type=jnp.float32)

    @pl.when(pl.program_id(2) == pl.num_programs(2) - 1)
    def _():
        o_ref[...] = acc_ref[...].astype(o_ref.dtype)


def _matmul_bias_kernel(x_ref, w_ref, b_ref, o_ref, acc_ref):
    @pl.when(pl.program_id(2) == 0)
    def _():
        acc_ref[...] = jnp.zeros_like(acc_ref)

    acc_ref[...] += jnp.dot(x_ref[...], w_ref[...],
                            preferred_element_type=jnp.float32)

    @pl.when(pl.program_id(2) == pl.num_programs(2) - 1)
    def _():
        # bias add fused into the last-K writeback (f32, rides the MXU drain)
        o_ref[...] = (acc_ref[...] + b_ref[...].astype(jnp.float32)).astype(o_ref.dtype)


def _tiled_matmul(x, w, bias=None, out_dtype=None):
    """x: (M, K), w: (K, N), optional bias (N,) -> (M, N), f32 accumulation."""
    M, K = x.shape
    K2, N = w.shape
    assert K == K2
    out_dtype = jnp.dtype(out_dtype) if out_dtype is not None else x.dtype

    tm = _pick_tile(M, (512, 256, 128))
    tn = _pick_tile(N, (512, 256, 128))
    tk = _pick_tile(K, (512, 256, 128))
    grid = (M // tm, N // tn, K // tk)

    cost = pl.CostEstimate(
        flops=2 * M * N * K,
        transcendentals=0,
        bytes_accessed=(M * K + K * N) * x.dtype.itemsize + M * N * out_dtype.itemsize)

    in_specs = [pl.BlockSpec((tm, tk), lambda i, j, k: (i, k)),
                pl.BlockSpec((tk, tn), lambda i, j, k: (k, j))]
    args = [x, w]
    kernel = _matmul_kernel
    if bias is not None:
        in_specs.append(pl.BlockSpec((1, tn), lambda i, j, k: (0, j)))
        args.append(bias.reshape(1, N))
        kernel = _matmul_bias_kernel

    return pl.pallas_call(
        kernel,
        out_shape=jax.ShapeDtypeStruct((M, N), out_dtype),
        grid=grid,
        in_specs=in_specs,
        out_specs=pl.BlockSpec((tm, tn), lambda i, j, k: (i, j)),
        scratch_shapes=[pltpu.VMEM((tm, tn), jnp.float32)],
        compiler_params=pltpu.CompilerParams(
            dimension_semantics=("parallel", "parallel", "arbitrary"),
            vmem_limit_bytes=_VMEM_LIMIT),
        cost_estimate=cost,
    )(*args)


def matmul(x, w, out_dtype=None):
    return _tiled_matmul(x, w, None, out_dtype)


def matmul_bias(x, w, b, out_dtype=None):
    return _tiled_matmul(x, w, b, out_dtype)


# ------------------- grouped (per-head) compression conv --------------------

def _grouped_conv_kernel(win_ref, w_ref, b_ref, o_ref):
    # One head (group) per outer grid step: (tm, cf*dg) @ (cf*dg, dg) + bias.
    acc = jnp.dot(win_ref[...], w_ref[...], preferred_element_type=jnp.float32)
    o_ref[...] = (acc + b_ref[...].astype(jnp.float32)).astype(o_ref.dtype)


def grouped_compress(win, w_g, b_g, out_dtype):
    """win: (heads, M2, cf*dg), w_g: (heads, cf*dg, dg), b_g: (heads, 1, dg)."""
    heads, M2, kdim = win.shape
    dg = w_g.shape[-1]
    tm = _pick_tile(M2, (512, 256, 128))
    grid = (heads, M2 // tm)
    return pl.pallas_call(
        _grouped_conv_kernel,
        out_shape=jax.ShapeDtypeStruct((heads, M2, dg), out_dtype),
        grid=grid,
        in_specs=[pl.BlockSpec((None, tm, kdim), lambda g, m: (g, m, 0)),
                  pl.BlockSpec((None, kdim, dg), lambda g, m: (g, 0, 0)),
                  pl.BlockSpec((None, 1, dg), lambda g, m: (g, 0, 0))],
        out_specs=pl.BlockSpec((None, tm, dg), lambda g, m: (g, m, 0)),
        compiler_params=pltpu.CompilerParams(
            dimension_semantics=("parallel", "parallel"),
            vmem_limit_bytes=_VMEM_LIMIT),
    )(win, w_g, b_g)


# ------------------------------ attention kernel ----------------------------

def _attention_kernel(q_ref, k_ref, v_ref, o_ref, *, heads, scale):
    # One (batch element, query block) per grid step; all heads fused in-kernel.
    # q_ref/o_ref: (tq, d); k_ref/v_ref: (s, d) with s = t_comp + 1 (null slot).
    tq, d = q_ref.shape
    dh = d // heads
    q = q_ref[...]
    q = q * jnp.asarray(scale, dtype=q.dtype)   # fold d**-0.5 into q (tq*d mults, not tq*s per head)
    k = k_ref[...]
    v = v_ref[...]
    for h in range(heads):                      # static unroll over heads
        qh = q[:, h * dh:(h + 1) * dh]
        kh = k[:, h * dh:(h + 1) * dh]
        vh = v[:, h * dh:(h + 1) * dh]
        dots = jax.lax.dot_general(qh, kh, (((1,), (1,)), ((), ())),
                                   preferred_element_type=jnp.float32)   # (tq, s)
        dots = dots - jnp.max(dots, axis=-1, keepdims=True)
        e = jnp.exp(dots)
        denom = jnp.sum(e, axis=-1, keepdims=True)
        attn = e * pl.reciprocal(denom, approx=True)   # EUP reciprocal instead of VPU divide
        out_h = jnp.dot(attn.astype(vh.dtype), vh,
                        preferred_element_type=jnp.float32)
        o_ref[:, h * dh:(h + 1) * dh] = out_h.astype(o_ref.dtype)


def attention(q, k, v, heads, scale):
    """q: (b, t, d), k/v: (b, s, d) -> (b, t, d); no head split/merge in HBM."""
    b, t, d = q.shape
    s = k.shape[1]
    tq = _pick_tile(t, (512, 256, 128))
    grid = (b, t // tq)
    return pl.pallas_call(
        functools.partial(_attention_kernel, heads=heads, scale=scale),
        out_shape=jax.ShapeDtypeStruct((b, t, d), q.dtype),
        grid=grid,
        in_specs=[pl.BlockSpec((None, tq, d), lambda i, j: (i, j, 0)),
                  pl.BlockSpec((None, s, d), lambda i, j: (i, 0, 0)),
                  pl.BlockSpec((None, s, d), lambda i, j: (i, 0, 0))],
        out_specs=pl.BlockSpec((None, tq, d), lambda i, j: (i, j, 0)),
        compiler_params=pltpu.CompilerParams(
            dimension_semantics=("parallel", "parallel"),
            vmem_limit_bytes=_VMEM_LIMIT),
    )(q, k, v)


# ------------------------------ parameter setup -----------------------------

def init_params(key, dim, heads, cf):
    dg = dim // heads
    k1, k2, k3, k4, k5 = jax.random.split(key, 5)
    conv_w = jax.random.normal(k2, (dim, dg, cf), jnp.float32) / np.sqrt(dg * cf)
    conv_b = jax.random.normal(k3, (dim,), jnp.float32) * 0.01
    params = {
        # to_qkv: Linear(dim, 3*dim, bias=False); stored (in, out) for x @ W.
        "w_qkv": jax.random.normal(k1, (dim, 3 * dim), jnp.float32) / np.sqrt(dim),
        # ConvCompress: Conv1d(dim, dim, cf, stride=cf, groups=heads)
        # weight (out_ch=dim, in_ch_per_group=dg, kernel=cf), bias (dim,)
        "conv_w": conv_w,
        "conv_b": conv_b,
        # to_out: Linear(dim, dim) with bias; stored (in, out).
        "w_out": jax.random.normal(k4, (dim, dim), jnp.float32) / np.sqrt(dim),
        "b_out": jax.random.normal(k5, (dim,), jnp.float32) * 0.01,
        # null_k / null_v are zero-initialized Parameters in the module.
        "null_k": jnp.zeros((1, 1, dim), jnp.float32),
        "null_v": jnp.zeros((1, 1, dim), jnp.float32),
    }
    # Grouped per-head weight (heads, cf*dg, dg); windows are flattened tap-major
    # within a group: index = tap*dg + in_channel.
    wg = conv_w.reshape(heads, dg, dg, cf)                       # (g, o, c, k)
    wg = jnp.transpose(wg, (0, 3, 2, 1)).reshape(heads, cf * dg, dg)  # (g, k*dg + c, o)
    params["conv_w_grouped"] = wg
    params["conv_b_grouped"] = conv_b.reshape(heads, 1, dg)
    return params


# -------------------------------- forward pass ------------------------------

def memory_compressed_attention(x, params, heads, cf, compute_dtype=None):
    b, t, d = x.shape
    dg = d // heads
    dtype = jnp.dtype(compute_dtype) if compute_dtype is not None else x.dtype
    xc = x.astype(dtype)

    # qkv projection (tiled Pallas matmul, MXU in compute dtype, f32 accumulation)
    qkv = matmul(xc.reshape(b * t, d), params["w_qkv"].astype(dtype)).reshape(b, t, 3 * d)
    q, k, v = qkv[..., :d], qkv[..., d:2 * d], qkv[..., 2 * d:]

    # pre-pad sequence so length is divisible by the compression factor
    padding = cf - t % cf
    if padding < cf:
        k = jnp.pad(k, ((0, 0), (padding, 0), (0, 0)))
        v = jnp.pad(v, ((0, 0), (padding, 0), (0, 0)))

    # grouped strided conv == per-head (cf*dg, dg) contraction; K and V fused
    # into a single pallas_call (weight DMA'd once, 2x M per step).
    if cf != 1:
        t_pad = k.shape[1]
        t_comp = t_pad // cf

        def to_windows(z):  # (b, t_pad, d) -> (heads, b*t_comp, cf*dg)
            z = z.reshape(b, t_comp, cf, heads, dg)
            z = jnp.transpose(z, (3, 0, 1, 2, 4))
            return z.reshape(heads, b * t_comp, cf * dg)

        win = jnp.concatenate([to_windows(k), to_windows(v)], axis=1)
        comp = grouped_compress(win, params["conv_w_grouped"].astype(dtype),
                                params["conv_b_grouped"], dtype)      # (heads, 2*b*t_comp, dg)
        comp = jnp.transpose(comp, (1, 0, 2)).reshape(2, b, t_comp, d)
        k, v = comp[0], comp[1]

    # prepend null key/value
    null_k = jnp.broadcast_to(params["null_k"].astype(dtype), (b, 1, d))
    null_v = jnp.broadcast_to(params["null_v"].astype(dtype), (b, 1, d))
    k = jnp.concatenate([null_k, k], axis=1)
    v = jnp.concatenate([null_v, v], axis=1)

    # attention: grid over (batch, query block), heads fused in-kernel, (b, t, d)
    # layout throughout (no split_heads / merge transposes in HBM). Scale is
    # d**-0.5 (full model dim) to match the module.
    out = attention(q, k, v, heads, float(d) ** -0.5)

    # output projection (tiled Pallas matmul, bias fused into last-K writeback)
    out = matmul_bias(out.reshape(b * t, d), params["w_out"].astype(dtype), params["b_out"])
    return out.reshape(b, t, d).astype(x.dtype)


# ----------------------------- pure-JAX reference ---------------------------

def reference(x, params, heads, cf):
    b, t, d = x.shape
    dh = d // heads
    dg = d // heads
    qkv = x @ params["w_qkv"]
    q, k, v = jnp.split(qkv, 3, axis=-1)
    padding = cf - t % cf
    if padding < cf:
        k = jnp.pad(k, ((0, 0), (padding, 0), (0, 0)))
        v = jnp.pad(v, ((0, 0), (padding, 0), (0, 0)))

    def compress(z):
        t_comp = z.shape[1] // cf
        zw = z.reshape(b, t_comp, cf, heads, dg)                    # b j k g c
        w = params["conv_w"].reshape(heads, dg, dg, cf)             # g o c k
        out = jnp.einsum("bjkgc,gock->bjgo", zw, w).reshape(b, t_comp, d)
        return out + params["conv_b"]

    if cf != 1:
        k, v = compress(k), compress(v)
    k = jnp.concatenate([jnp.broadcast_to(params["null_k"], (b, 1, d)), k], axis=1)
    v = jnp.concatenate([jnp.broadcast_to(params["null_v"], (b, 1, d)), v], axis=1)

    def split_heads(z):
        return z.reshape(b, z.shape[1], heads, dh).transpose(0, 2, 1, 3)

    qh, kh, vh = map(split_heads, (q, k, v))
    dots = jnp.einsum("bhid,bhjd->bhij", qh, kh) * float(d) ** -0.5
    attn = jax.nn.softmax(dots, axis=-1)
    out = jnp.einsum("bhij,bhjd->bhid", attn, vh)
    out = out.transpose(0, 2, 1, 3).reshape(b, t, d)
    return out @ params["w_out"] + params["b_out"]


# ------------------------------------ main -----------------------------------

if __name__ == "__main__":
    dim, heads, cf = 32, 8, 3
    b, t = 2, 8

    key = jax.random.PRNGKey(0)
    kx, kp = jax.random.split(key)
    x = jax.random.normal(kx, (b, t, dim), jnp.float32)
    params = init_params(kp, dim, heads, cf)

    ref = jax.block_until_ready(reference(x, params, heads, cf))

    # f32 path
    out = jax.block_until_ready(memory_compressed_attention(x, params, heads, cf))
    np.testing.assert_allclose(np.asarray(out), np.asarray(ref), rtol=1e-2, atol=1e-2)
    assert out.shape == (b, t, dim)

    # bf16 MXU path (f32 accumulation + f32 softmax inside the kernels)
    out_bf16 = jax.block_until_ready(
        memory_compressed_attention(x, params, heads, cf, compute_dtype=jnp.bfloat16))
    np.testing.assert_allclose(np.asarray(out_bf16), np.asarray(ref), rtol=5e-2, atol=5e-2)

    print("KERNEL_OK")
</pallas_src>

<mosaic_0001>
module attributes {stable_mosaic.version = 11 : i64} {
  func.func @_matmul_kernel(%arg0: i32, %arg1: i32, %arg2: i32, %arg3: memref<16x32xf32, #tpu.memory_space<vmem>>, %arg4: memref<32x96xf32, #tpu.memory_space<vmem>>, %arg5: memref<16x96xf32, #tpu.memory_space<vmem>>, %arg6: memref<16x96xf32, #tpu.memory_space<vmem>>) attributes {dimension_semantics = [#tpu.dimension_semantics<parallel>, #tpu.dimension_semantics<parallel>, #tpu.dimension_semantics<arbitrary>], iteration_bounds = array<i64: 1, 1, 1>, scalar_prefetch = 0 : i64, scratch_operands = 1 : i64, tpu.core_type = #tpu.core_type<tc>, window_params = [{transform_indices = @transform_0, window_bounds = array<i64: 16, 32>}, {transform_indices = @transform_1, window_bounds = array<i64: 32, 96>}, {transform_indices = @transform_2, window_bounds = array<i64: 16, 96>}]} {
    %c0_i32 = arith.constant 0 : i32
    %0 = arith.cmpi eq, %arg2, %c0_i32 : i32
    %1 = arith.extui %0 : i1 to i32
    %c0_i32_0 = arith.constant 0 : i32
    %2 = arith.cmpi ne, %1, %c0_i32_0 : i32
    scf.if %2 {
      %cst_10 = arith.constant 0.000000e+00 : f32
      %12 = vector.broadcast %cst_10 : f32 to vector<16x96xf32>
      %c0_11 = arith.constant 0 : index
      %c0_12 = arith.constant 0 : index
      %13 = vector.load %arg6[%c0_11, %c0_12] : memref<16x96xf32, #tpu.memory_space<vmem>>, vector<16x96xf32>
      tpu.vector_store %arg6[%c0_11, %c0_12], %12 {strides = array<i32>} : memref<16x96xf32, #tpu.memory_space<vmem>>, vector<16x96xf32>,
    } else {
    }
    %c0 = arith.constant 0 : index
    %c0_1 = arith.constant 0 : index
    %3 = vector.load %arg6[%c0, %c0_1] : memref<16x96xf32, #tpu.memory_space<vmem>>, vector<16x96xf32>
    %c0_2 = arith.constant 0 : index
    %c0_3 = arith.constant 0 : index
    %4 = vector.load %arg3[%c0_2, %c0_3] : memref<16x32xf32, #tpu.memory_space<vmem>>, vector<16x32xf32>
    %c0_4 = arith.constant 0 : index
    %c0_5 = arith.constant 0 : index
    %5 = vector.load %arg4[%c0_4, %c0_5] : memref<32x96xf32, #tpu.memory_space<vmem>>, vector<32x96xf32>
    %cst = arith.constant dense<0.000000e+00> : vector<16x96xf32>
    %6 = tpu.matmul %4, %5, %cst {dimension_numbers = #tpu.dot_dimension_numbers<[1], [0], [0], [1], [0, 0, 1, 1], [], []>} : vector<16x32xf32>, vector<32x96xf32>, vector<16x96xf32> -> vector<16x96xf32>
    %7 = arith.addf %3, %6 : vector<16x96xf32>
    %c0_6 = arith.constant 0 : index
    %c0_7 = arith.constant 0 : index
    %8 = vector.load %arg6[%c0_6, %c0_7] : memref<16x96xf32, #tpu.memory_space<vmem>>, vector<16x96xf32>
    tpu.vector_store %arg6[%c0_6, %c0_7], %7 {strides = array<i32>} : memref<16x96xf32, #tpu.memory_space<vmem>>, vector<16x96xf32>,
    %c0_i32_8 = arith.constant 0 : i32
    %9 = arith.cmpi eq, %arg2, %c0_i32_8 : i32
    %10 = arith.extui %9 : i1 to i32
    %c0_i32_9 = arith.constant 0 : i32
    %11 = arith.cmpi ne, %10, %c0_i32_9 : i32
    scf.if %11 {
      %c0_10 = arith.constant 0 : index
      %c0_11 = arith.constant 0 : index
      %12 = vector.load %arg6[%c0_10, %c0_11] : memref<16x96xf32, #tpu.memory_space<vmem>>, vector<16x96xf32>
      %c0_12 = arith.constant 0 : index
      %c0_13 = arith.constant 0 : index
      %13 = vector.load %arg5[%c0_12, %c0_13] : memref<16x96xf32, #tpu.memory_space<vmem>>, vector<16x96xf32>
      tpu.vector_store %arg5[%c0_12, %c0_13], %12 {strides = array<i32>} : memref<16x96xf32, #tpu.memory_space<vmem>>, vector<16x96xf32>,
    } else {
    }
    return
  }
  func.func @transform_0(%arg0: i32, %arg1: i32, %arg2: i32) -> (i32, i32) {
    %c0_i32 = arith.constant 0 : i32
    return %arg0, %arg2 : i32, i32
  }
  func.func @transform_1(%arg0: i32, %arg1: i32, %arg2: i32) -> (i32, i32) {
    %c0_i32 = arith.constant 0 : i32
    return %arg2, %arg1 : i32, i32
  }
  func.func @transform_2(%arg0: i32, %arg1: i32, %arg2: i32) -> (i32, i32) {
    %c0_i32 = arith.constant 0 : i32
    return %arg0, %arg1 : i32, i32
  }
}

</mosaic_0001>

<bundles_post_ra>
// kernel: tpu_custom_call.1
= control target key start
LH: loop header
LB: loop body
LE: loop exit
PB: predicated region body
PF: predicated region fallthrough
CT: control target
= control target key end

     0   :  { %7 = vsyncpa [#allocation4], 0  ;;  %s256_s0 = inlined_call_operand.hbm [shape: f32[16,32], index: 0, kind: input, shape index: {}]   ;;  %s257_s1 = inlined_call_operand.hbm [shape: f32[32,96], index: 1, kind: input, shape index: {}]   ;;  %s258_s2 = inlined_call_operand.hbm [shape: f32[16,96], index: 2, kind: output, shape index: {}]  }
   0x1   :  { %8 = vsyncpa [#allocation7], 0 }
   0x2   :  { %9 = vsyncpa [#allocation5], 0  ;;  %s14_s11 = sshll.u32 %s256_s0, 4  ;;  %s211_s12 = smov [#allocation3]   ;;  %s15_s11 = int_to_ptr.hbm [resolvable:$true] %s14_s11 }
   0x3   :  { %s16_s13 = sshll.u32 %s211_s12, 4  ;;  %s27_s16 = sshll.u32 %s257_s1, 4  ;;  %s17_s13 = int_to_ptr.vmem [resolvable:$true] %s16_s13  ;;  %s28_s16 = int_to_ptr.hbm [resolvable:$true] %s27_s16 }
   0x4   :  { %s212_s17 = smov 128   ;;  %s213_s18 = smov 8  }
   0x5   :  { %22 = dma.hbm_to_vmem [thread:$0]  %s15_s11, 256, %s17_s13, [#allocation4], %s212_s17, %s212_s17, %s213_s18  }
   0x6   :  { %s214_s19 = smov [#allocation6]  }
   0x7   :  { %s29_s20 = sshll.u32 %s214_s19, 4  ;;  %s30_s20 = int_to_ptr.vmem [resolvable:$true] %s29_s20 }
   0x8   :  { %35 = dma.hbm_to_vmem [thread:$0]  %s28_s16, 512, %s30_s20, [#allocation7], %s212_s17, %s212_s17, %s213_s18  }
   0x9   :  { %205 = dma.done.wait [#allocation4], 256  }
   0xa   :  { %206 = vsyncadd [#allocation4], 4294967040 }
   0xb   :  { %207 = dma.done.wait [#allocation7], 512  }
   0xc   :  { %208 = vsyncadd [#allocation7], 4294966784  ;;  %vm48_vm0 = vcmask 785408   ;;  %v215_v0 = vmov 0.0   ;;  %v58_v1 = vld [vmem:[#allocation6 + $0x18] sm:$0xff]  ;;  %v57_v2 = vld [vmem:[#allocation6 + $0x10] sm:$0xff] }
   0xd   :  { %49 = vst.msk [vmem:[#allocation2] sm:$0xff] %vm48_vm0, %v215_v0  ;;  %78 = vmatpush.msra.mxu0 %v58_v1  ;;  %123 = vmatpush.msra.mxu1 %v58_v1  ;;  %v56_v3 = vld [vmem:[#allocation6 + $0x8] sm:$0xff]  ;;  %v55_v4 = vld [vmem:[#allocation6] sm:$0xff]  ;;  %v53_v5 = vld [vmem:[#allocation3] sm:$0xff]  ;;  %vm59_vm1 = vcmask 261120   ;;  %s216_s0 = smov [#allocation8]  }
   0xe   :  { %50 = vst.msk [vmem:[#allocation2 + $0x8] sm:$0xff] %vm48_vm0, %v215_v0  ;;  %v54_v6 = vld [vmem:[#allocation3 + $0x8] sm:$0xff]  ;;  %s105_s1 = sshll.u32 %s216_s0, 4  ;;  %s107_s23 = sshll.u32 %s258_s2, 4  ;;  %s106_s1 = int_to_ptr.vmem [resolvable:$true] %s105_s1  ;;  %s108_s23 = int_to_ptr.hbm [resolvable:$true] %s107_s23 }
   0xf   :  { %79 = vmatpush.msra.mxu0 %v57_v2  ;;  %124 = vmatpush.msra.mxu1 %v57_v2 }
  0x11   :  { %80 = vmatpush.msra.mxu0 %v56_v3  ;;  %125 = vmatpush.msra.mxu1 %v56_v3 }
  0x13   :  { %81 = vmatpush.msra.mxu0 %v55_v4  ;;  %126 = vmatpush.msra.mxu1 %v55_v4 }
  0x14   :  { %121 = vmatmul.msk.f32.vlgmr.msra.gmra.mxu0 %vm59_vm1, %v53_v5  ;;  %122 = vmatmul.msk.f32.vlgmr.msra.gmra.mxu1 %vm59_vm1, %v54_v6  ;;  %v51_v7 = vld [vmem:[#allocation2] sm:$0xff] }
  0x15   :  { %v52_v8 = vld [vmem:[#allocation2 + $0x8] sm:$0xff] }
  0x91   :  { %v83_v9 = vpop.f32.mrf.mxu0  ;;  %v86_v10 = vpop.f32.mrf.mxu1 }
  0x92   :  { %v89_v11 = vadd.f32 %v83_v9, %v51_v7  ;;  %v90_v12 = vadd.f32 %v86_v10, %v52_v8 }
  0x94   :  { %92 = vst.msk [vmem:[#allocation2] sm:$0xff] %vm48_vm0, %v89_v11 }
  0x95   :  { %93 = vst.msk [vmem:[#allocation2 + $0x8] sm:$0xff] %vm48_vm0, %v90_v12 }
  0x9b   :  { %v97_v13 = vld [vmem:[#allocation2] sm:$0xff] }
  0x9c   :  { %v98_v14 = vld [vmem:[#allocation2 + $0x8] sm:$0xff]  ;;  %99 = vst.msk [vmem:[#allocation8] sm:$0xff] %vm48_vm0, %v97_v13 }
  0x9d   :  { %100 = vst.msk [vmem:[#allocation8 + $0x8] sm:$0xff] %vm48_vm0, %v98_v14 }
  0x9e   :  { %113 = dma.vmem_to_hbm [thread:$0]  %s106_s1, 256, %s108_s23, [#allocation5], %s212_s17, %s212_s17, %s213_s18  }
  0x9f   :  { %209 = dma.done.wait [#allocation5], 256  }
  0xa0   :  { %210 = vsyncadd [#allocation5], 4294967040 }
  0xa1   :  { %118 = vsyncpa [#allocation4], 1 }
  0xa2   :  { %119 = vsyncpa [#allocation7], 1 }
  0xa3   :  { %120 = vsyncpa [#allocation5], 1 }

</bundles_post_ra>
